<compile_context>
chip_gen: v5e
topology: v5e:2x2
jax: 0.10.0
libtpu: 0.0.40
codegen_flags: <defaults>
</compile_context>

<pallas_src>
import functools
import math

import jax
import jax.numpy as jnp
from jax.experimental import pallas as pl
from jax.experimental.pallas import tpu as pltpu

LANES = 128
CHUNK_ROWS = 64                 # 8 f32 vregs per temporary inside the chunk loop
MAX_TILE_ROWS_WIDE = 1024       # f32 inputs: 1024 x 128 x 4 B = 512 KiB / input / block
MAX_TILE_ROWS_NARROW = 2048     # bf16/fp16 inputs: keep each DMA at 512 KiB


def _round_up(a, b):
    return ((a + b - 1) // b) * b


def _cdiv(a, b):
    return (a + b - 1) // b


def _focal_partials_kernel(x_ref, gt_ref, loss_ref, pos_ref, *,
                           lo, hi, rows_full, tile_rows, tiles_total,
                           inner_steps, last_tile_full, has_dup):
    p = pl.program_id(0)        # megacore-parallel axis
    i = pl.program_id(1)        # reduction axis (output blocks stay resident)

    @pl.when(i == 0)
    def _init():
        loss_ref[...] = jnp.zeros_like(loss_ref)
        pos_ref[...] = jnp.zeros_like(pos_ref)

    # Logical (unclamped) tile index; the BlockSpec index_map clamps the DMA so
    # it never targets a fully out-of-range block.
    t = p * inner_steps + i
    n_chunks = tile_rows // CHUNK_ROWS

    def accumulate(masked):
        def chunk_body(c, carry):
            acc_l, acc_p = carry
            r0 = pl.multiple_of(c * CHUNK_ROWS, CHUNK_ROWS)
            x = x_ref[pl.ds(r0, CHUNK_ROWS), :].astype(jnp.float32)
            gt = gt_ref[pl.ds(r0, CHUNK_ROWS), :].astype(jnp.float32)

            if masked:
                # Only the ragged edge tile pays for this: rows at or beyond
                # `rows_full` hold garbage from the partial block DMA.
                row_ids = jax.lax.broadcasted_iota(
                    jnp.int32, (CHUNK_ROWS, LANES), 0)
                limit = rows_full - (t * tile_rows + c * CHUNK_ROWS)
                valid = row_ids < limit
                gt = jnp.where(valid, gt, 2.0)   # -> pos_inds = neg_inds = 0
                x = jnp.where(valid, x, 0.0)     # keep transcendentals finite

            # sigmoid + clamp, refactored through the logit:
            #   pred        = clip(sigmoid(x), c, 1-c) = sigmoid(clip(x, lo, hi))
            #   log(pred)   = -log(1 + e),   e = exp(-xc)
            #   log(1-pred) = log(pred) - xc
            xc = jnp.clip(x, lo, hi)
            e = jnp.exp(-xc)
            ope = 1.0 + e
            log_pred = -jnp.log(ope)
            log_one_m_pred = log_pred - xc
            pred = 1.0 / ope
            one_m_pred = e * pred

            pos_inds = (gt == 1.0).astype(jnp.float32)
            neg_inds = (gt < 1.0).astype(jnp.float32)
            one_m_gt = 1.0 - gt
            w2 = one_m_gt * one_m_gt
            neg_weights = w2 * w2

            pos_loss = log_pred * (one_m_pred * one_m_pred) * pos_inds
            neg_loss = log_one_m_pred * (pred * pred) * neg_weights * neg_inds
            combined = pos_loss + neg_loss

            # Pure VPU adds: (CHUNK_ROWS,128) -> (8,128) per-lane partials.
            acc_l = acc_l + combined.reshape(-1, 8, LANES).sum(axis=0)
            acc_p = acc_p + pos_inds.reshape(-1, 8, LANES).sum(axis=0)
            return acc_l, acc_p

        zeros = jnp.zeros((8, LANES), jnp.float32)
        acc_l, acc_p = jax.lax.fori_loop(0, n_chunks, chunk_body, (zeros, zeros))
        loss_ref[...] += acc_l
        pos_ref[...] += acc_p

    if last_tile_full:
        if has_dup:
            @pl.when(t < tiles_total)
            def _fast():
                accumulate(masked=False)
        else:
            accumulate(masked=False)
    else:
        @pl.when(t < tiles_total - 1)
        def _fast():
            accumulate(masked=False)

        @pl.when(t == tiles_total - 1)
        def _edge():
            accumulate(masked=True)
        # t > tiles_total - 1 (duplicated, clamped tile): contributes nothing.


def _run_partials(x2, gt2, clamp, rows_full):
    bytes_per_elem = max(x2.dtype.itemsize, gt2.dtype.itemsize)
    max_rows = MAX_TILE_ROWS_NARROW if bytes_per_elem <= 2 else MAX_TILE_ROWS_WIDE
    tile_rows = min(max_rows, _round_up(rows_full, CHUNK_ROWS))
    tiles_total = _cdiv(rows_full, tile_rows)
    num_par = 2 if tiles_total >= 2 else 1
    inner_steps = _cdiv(tiles_total, num_par)
    has_dup = (num_par * inner_steps != tiles_total)
    last_tile_full = (rows_full % tile_rows == 0)

    lo = math.log(clamp / (1.0 - clamp))   # logit(clamp)
    hi = -lo                               # logit(1 - clamp)

    def in_map(p, i):
        # Clamp so the DMA never targets a fully out-of-bounds block; the
        # kernel itself skips/masks duplicated or ragged tiles.
        return (jnp.minimum(p * inner_steps + i, tiles_total - 1), 0)

    def out_map(p, i):
        return (p, 0)

    kernel = functools.partial(
        _focal_partials_kernel,
        lo=lo, hi=hi, rows_full=rows_full, tile_rows=tile_rows,
        tiles_total=tiles_total, inner_steps=inner_steps,
        last_tile_full=last_tile_full, has_dup=has_dup)

    # NOTE(v7x): if profiling shows the leading "parallel" axis does not shard
    # across both TensorCores, switch its semantics to pltpu.CORE_PARALLEL.
    return pl.pallas_call(
        kernel,
        out_shape=(
            jax.ShapeDtypeStruct((num_par * 8, LANES), jnp.float32),
            jax.ShapeDtypeStruct((num_par * 8, LANES), jnp.float32),
        ),
        grid_spec=pltpu.PrefetchScalarGridSpec(
            num_scalar_prefetch=0,
            grid=(num_par, inner_steps),
            in_specs=[pl.BlockSpec((tile_rows, LANES), in_map),
                      pl.BlockSpec((tile_rows, LANES), in_map)],
            out_specs=[pl.BlockSpec((8, LANES), out_map),
                       pl.BlockSpec((8, LANES), out_map)]),
        compiler_params=pltpu.CompilerParams(
            dimension_semantics=("parallel", "arbitrary")),
    )(x2, gt2)


def _focal_terms_tail(x, gt, clamp):
    """Plain-jnp loss terms for the <=127-element ragged tail."""
    x = x.astype(jnp.float32)
    gt = gt.astype(jnp.float32)
    pred = jnp.clip(jax.nn.sigmoid(x), clamp, 1.0 - clamp)
    pos_inds = (gt == 1.0).astype(jnp.float32)
    neg_inds = (gt < 1.0).astype(jnp.float32)
    neg_weights = (1.0 - gt) ** 4
    pos_loss = jnp.log(pred) * (1.0 - pred) ** 2 * pos_inds
    neg_loss = jnp.log(1.0 - pred) * pred ** 2 * neg_weights * neg_inds
    return jnp.sum(pos_loss + neg_loss), jnp.sum(pos_inds)


def kpoint_focal_loss(out, target, clamp=0.001, weight=1.0):
    """Pallas implementation of KpointFocalLoss.forward(out, target)."""
    assert out.shape == target.shape
    clamp = float(clamp)
    assert 0.0 < clamp < 0.5
    total = int(math.prod(out.shape))

    x = out.reshape(-1)
    gt = target.reshape(-1)
    rows_full = total // LANES
    rem = total - rows_full * LANES

    loss_sum = jnp.float32(0.0)
    num_pos = jnp.float32(0.0)

    if rows_full > 0:
        aligned = rows_full * LANES
        x_main = x if rem == 0 else x[:aligned]
        gt_main = gt if rem == 0 else gt[:aligned]
        loss_part, pos_part = _run_partials(
            x_main.reshape(rows_full, LANES),
            gt_main.reshape(rows_full, LANES),
            clamp, rows_full)
        loss_sum = loss_sum + jnp.sum(loss_part)
        num_pos = num_pos + jnp.sum(pos_part)

    if rem > 0:
        # Ragged tail handled outside the kernel: avoids a full-array pad copy.
        tail_loss, tail_pos = _focal_terms_tail(
            x[rows_full * LANES:], gt[rows_full * LANES:], clamp)
        loss_sum = loss_sum + tail_loss
        num_pos = num_pos + tail_pos

    # If num_pos == 0 then pos_loss_sum == 0, so -loss_sum == -neg_loss_sum,
    # matching the PyTorch `if num_pos == 0` branch (denominator 1).
    denom = jnp.where(num_pos > 0.0, num_pos, 1.0)
    return jnp.float32(weight) * (-loss_sum / denom)


def _reference_loss(out, target, clamp=0.001, weight=1.0):
    pred = jnp.clip(jax.nn.sigmoid(out.astype(jnp.float32)), clamp, 1.0 - clamp)
    gt = target.astype(jnp.float32)
    pos_inds = (gt == 1.0).astype(jnp.float32)
    neg_inds = (gt < 1.0).astype(jnp.float32)
    neg_weights = (1.0 - gt) ** 4
    pos_loss = jnp.sum(jnp.log(pred) * (1.0 - pred) ** 2 * pos_inds)
    neg_loss = jnp.sum(jnp.log(1.0 - pred) * pred ** 2 * neg_weights * neg_inds)
    num_pos = jnp.sum(pos_inds)
    loss = jnp.where(num_pos == 0.0,
                     -neg_loss,
                     -(pos_loss + neg_loss) / jnp.where(num_pos == 0.0, 1.0, num_pos))
    return weight * loss


if __name__ == "__main__":
    key = jax.random.PRNGKey(0)
    k1, k2, k3 = jax.random.split(key, 3)

    # --- main check: small NCHW logits + gaussian-like keypoint heatmap ---
    B, C, H, W = 2, 4, 16, 16
    out = jax.random.normal(k1, (B, C, H, W), dtype=jnp.float32) * 2.0
    target = jax.random.uniform(k2, (B, C, H, W), dtype=jnp.float32) * 0.9
    peak_rows = jax.random.randint(k3, (B, C), 0, H)
    for b in range(B):
        for c in range(C):
            target = target.at[b, c, peak_rows[b, c], (b * 3 + c) % W].set(1.0)

    loss = jax.block_until_ready(kpoint_focal_loss(out, target, clamp=0.001, weight=1.0))
    ref = _reference_loss(out, target, clamp=0.001, weight=1.0)
    assert jnp.allclose(loss, ref, rtol=1e-5, atol=1e-5), (loss, ref)

    # --- bf16 inputs (kernel casts to f32 internally) ---
    loss_bf16 = jax.block_until_ready(
        kpoint_focal_loss(out.astype(jnp.bfloat16), target.astype(jnp.bfloat16)))
    ref_bf16 = _reference_loss(out.astype(jnp.bfloat16), target.astype(jnp.bfloat16))
    assert jnp.allclose(loss_bf16, ref_bf16, rtol=1e-4, atol=1e-4), (loss_bf16, ref_bf16)

    # --- ragged size (not a multiple of 128): prefix kernel + jnp tail ---
    out2 = jax.random.normal(k1, (2, 3, 7, 5), dtype=jnp.float32)
    tgt2 = (jax.random.uniform(k2, (2, 3, 7, 5), dtype=jnp.float32) * 0.9
            ).at[0, 0, 0, 0].set(1.0)
    loss2 = jax.block_until_ready(kpoint_focal_loss(out2, tgt2))
    ref2 = _reference_loss(out2, tgt2)
    assert jnp.allclose(loss2, ref2, rtol=1e-5, atol=1e-5), (loss2, ref2)

    # --- larger multi-tile case: exercises the parallel axis, unmasked fast
    #     path and duplicated-tile skip (tiles_total=3, grid=(2,2)) ---
    out3 = jax.random.normal(k1, (3, 4, 128, 256), dtype=jnp.float32) * 2.0
    tgt3 = (jax.random.uniform(k2, (3, 4, 128, 256), dtype=jnp.float32) * 0.9
            ).at[:, :, 0, 0].set(1.0)
    loss3 = jax.block_until_ready(kpoint_focal_loss(out3, tgt3))
    ref3 = _reference_loss(out3, tgt3)
    assert jnp.allclose(loss3, ref3, rtol=1e-4, atol=1e-5), (loss3, ref3)

    print("KERNEL_OK")
</pallas_src>

<mosaic_0001>
module attributes {stable_mosaic.version = 11 : i64} {
  func.func @_focal_partials_kernel(%arg0: i32, %arg1: i32, %arg2: memref<64x128xf32, #tpu.memory_space<vmem>>, %arg3: memref<64x128xf32, #tpu.memory_space<vmem>>, %arg4: memref<8x128xf32, #tpu.memory_space<vmem>>, %arg5: memref<8x128xf32, #tpu.memory_space<vmem>>) attributes {dimension_semantics = [#tpu.dimension_semantics<parallel>, #tpu.dimension_semantics<arbitrary>], iteration_bounds = array<i64: 1, 1>, scalar_prefetch = 0 : i64, scratch_operands = 0 : i64, tpu.core_type = #tpu.core_type<tc>, window_params = [{transform_indices = @transform_0, window_bounds = array<i64: 64, 128>}, {transform_indices = @transform_1, window_bounds = array<i64: 64, 128>}, {transform_indices = @transform_2, window_bounds = array<i64: 8, 128>}, {transform_indices = @transform_3, window_bounds = array<i64: 8, 128>}]} {
    %c0_i32 = arith.constant 0 : i32
    %0 = arith.cmpi eq, %arg1, %c0_i32 : i32
    %1 = arith.extui %0 : i1 to i32
    %c0_i32_0 = arith.constant 0 : i32
    %2 = arith.cmpi ne, %1, %c0_i32_0 : i32
    scf.if %2 {
      %cst = arith.constant 0.000000e+00 : f32
      %11 = vector.broadcast %cst : f32 to vector<8x128xf32>
      %c0 = arith.constant 0 : index
      %c0_5 = arith.constant 0 : index
      %12 = vector.load %arg4[%c0, %c0_5] : memref<8x128xf32, #tpu.memory_space<vmem>>, vector<8x128xf32>
      tpu.vector_store %arg4[%c0, %c0_5], %11 {strides = array<i32>} : memref<8x128xf32, #tpu.memory_space<vmem>>, vector<8x128xf32>,
      %cst_6 = arith.constant 0.000000e+00 : f32
      %13 = vector.broadcast %cst_6 : f32 to vector<8x128xf32>
      %c0_7 = arith.constant 0 : index
      %c0_8 = arith.constant 0 : index
      %14 = vector.load %arg5[%c0_7, %c0_8] : memref<8x128xf32, #tpu.memory_space<vmem>>, vector<8x128xf32>
      tpu.vector_store %arg5[%c0_7, %c0_8], %13 {strides = array<i32>} : memref<8x128xf32, #tpu.memory_space<vmem>>, vector<8x128xf32>,
    } else {
    }
    %c1_i32 = arith.constant 1 : i32
    %3 = arith.muli %arg0, %c1_i32 : i32
    %4 = arith.addi %3, %arg1 : i32
    %c0_i32_1 = arith.constant 0 : i32
    %5 = arith.cmpi slt, %4, %c0_i32_1 : i32
    %6 = arith.extui %5 : i1 to i32
    %c0_i32_2 = arith.constant 0 : i32
    %7 = arith.cmpi ne, %6, %c0_i32_2 : i32
    scf.if %7 {
      %cst = arith.constant 0.000000e+00 : f32
      %11 = vector.broadcast %cst : f32 to vector<8x128xf32>
      %c0_i32_5 = arith.constant 0 : i32
      %c64_i32 = arith.constant 64 : i32
      %12 = arith.muli %c0_i32_5, %c64_i32 : i32
      %13 = tpu.assume_multiple %12, 64 : i32
      %14 = arith.index_cast %13 : i32 to index
      %c0 = arith.constant 0 : index
      %15 = vector.load %arg2[%14, %c0] : memref<64x128xf32, #tpu.memory_space<vmem>>, vector<64x128xf32>
      %16 = arith.index_cast %13 : i32 to index
      %c0_6 = arith.constant 0 : index
      %17 = vector.load %arg3[%16, %c0_6] : memref<64x128xf32, #tpu.memory_space<vmem>>, vector<64x128xf32>
      %cst_7 = arith.constant -6.90675497 : f32
      %cst_8 = arith.constant 6.90675497 : f32
      %18 = vector.broadcast %cst_7 : f32 to vector<64x128xf32>
      %19 = arith.maximumf %18, %15 : vector<64x128xf32>
      %20 = vector.broadcast %cst_8 : f32 to vector<64x128xf32>
      %21 = arith.minimumf %20, %19 : vector<64x128xf32>
      %cst_9 = arith.constant 0.000000e+00 : f32
      %22 = vector.broadcast %cst_9 : f32 to vector<64x128xf32>
      %23 = arith.subf %22, %21 : vector<64x128xf32>
      %24 = math.exp %23 : vector<64x128xf32>
      %cst_10 = arith.constant 1.000000e+00 : f32
      %25 = vector.broadcast %cst_10 : f32 to vector<64x128xf32>
      %26 = arith.addf %25, %24 : vector<64x128xf32>
      %27 = math.log %26 : vector<64x128xf32>
      %cst_11 = arith.constant 0.000000e+00 : f32
      %28 = vector.broadcast %cst_11 : f32 to vector<64x128xf32>
      %29 = arith.subf %28, %27 : vector<64x128xf32>
      %30 = arith.subf %29, %21 : vector<64x128xf32>
      %cst_12 = arith.constant 1.000000e+00 : f32
      %31 = vector.broadcast %cst_12 : f32 to vector<64x128xf32>
      %32 = arith.divf %31, %26 : vector<64x128xf32>
      %33 = arith.mulf %24, %32 : vector<64x128xf32>
      %cst_13 = arith.constant 1.000000e+00 : f32
      %34 = vector.broadcast %cst_13 : f32 to vector<64x128xf32>
      %35 = arith.cmpf oeq, %17, %34 : vector<64x128xf32>
      %36 = arith.extui %35 : vector<64x128xi1> to vector<64x128xi32>
      %37 = arith.sitofp %36 : vector<64x128xi32> to vector<64x128xf32>
      %cst_14 = arith.constant 1.000000e+00 : f32
      %38 = vector.broadcast %cst_14 : f32 to vector<64x128xf32>
      %39 = arith.cmpf olt, %17, %38 : vector<64x128xf32>
      %40 = arith.extui %39 : vector<64x128xi1> to vector<64x128xi32>
      %41 = arith.sitofp %40 : vector<64x128xi32> to vector<64x128xf32>
      %cst_15 = arith.constant 1.000000e+00 : f32
      %42 = vector.broadcast %cst_15 : f32 to vector<64x128xf32>
      %43 = arith.subf %42, %17 : vector<64x128xf32>
      %44 = arith.mulf %43, %43 : vector<64x128xf32>
      %45 = arith.mulf %44, %44 : vector<64x128xf32>
      %46 = arith.mulf %33, %33 : vector<64x128xf32>
      %47 = arith.mulf %29, %46 : vector<64x128xf32>
      %48 = arith.mulf %47, %37 : vector<64x128xf32>
      %49 = arith.mulf %32, %32 : vector<64x128xf32>
      %50 = arith.mulf %30, %49 : vector<64x128xf32>
      %51 = arith.mulf %50, %45 : vector<64x128xf32>
      %52 = arith.mulf %51, %41 : vector<64x128xf32>
      %53 = arith.addf %48, %52 : vector<64x128xf32>
      %54 = vector.shape_cast %53 : vector<64x128xf32> to vector<8x8x128xf32>
      %cst_16 = arith.constant dense<0.000000e+00> : vector<8x128xf32>
      %55 = vector.multi_reduction <add>, %54, %cst_16 [0] : vector<8x8x128xf32> to vector<8x128xf32>
      %56 = arith.addf %11, %55 : vector<8x128xf32>
      %57 = vector.shape_cast %37 : vector<64x128xf32> to vector<8x8x128xf32>
      %cst_17 = arith.constant dense<0.000000e+00> : vector<8x128xf32>
      %58 = vector.multi_reduction <add>, %57, %cst_17 [0] : vector<8x8x128xf32> to vector<8x128xf32>
      %59 = arith.addf %11, %58 : vector<8x128xf32>
      %c1_i32_18 = arith.constant 1 : i32
      %c0_19 = arith.constant 0 : index
      %c0_20 = arith.constant 0 : index
      %60 = vector.load %arg4[%c0_19, %c0_20] : memref<8x128xf32, #tpu.memory_space<vmem>>, vector<8x128xf32>
      %61 = arith.addf %60, %56 : vector<8x128xf32>
      %c0_21 = arith.constant 0 : index
      %c0_22 = arith.constant 0 : index
      %62 = vector.load %arg4[%c0_21, %c0_22] : memref<8x128xf32, #tpu.memory_space<vmem>>, vector<8x128xf32>
      tpu.vector_store %arg4[%c0_21, %c0_22], %61 {strides = array<i32>} : memref<8x128xf32, #tpu.memory_space<vmem>>, vector<8x128xf32>,
      %c0_23 = arith.constant 0 : index
      %c0_24 = arith.constant 0 : index
      %63 = vector.load %arg5[%c0_23, %c0_24] : memref<8x128xf32, #tpu.memory_space<vmem>>, vector<8x128xf32>
      %64 = arith.addf %63, %59 : vector<8x128xf32>
      %c0_25 = arith.constant 0 : index
      %c0_26 = arith.constant 0 : index
      %65 = vector.load %arg5[%c0_25, %c0_26] : memref<8x128xf32, #tpu.memory_space<vmem>>, vector<8x128xf32>
      tpu.vector_store %arg5[%c0_25, %c0_26], %64 {strides = array<i32>} : memref<8x128xf32, #tpu.memory_space<vmem>>, vector<8x128xf32>,
    } else {
    }
    %c0_i32_3 = arith.constant 0 : i32
    %8 = arith.cmpi eq, %4, %c0_i32_3 : i32
    %9 = arith.extui %8 : i1 to i32
    %c0_i32_4 = arith.constant 0 : i32
    %10 = arith.cmpi ne, %9, %c0_i32_4 : i32
    scf.if %10 {
      %cst = arith.constant 0.000000e+00 : f32
      %11 = vector.broadcast %cst : f32 to vector<8x128xf32>
      %c0_i32_5 = arith.constant 0 : i32
      %c64_i32 = arith.constant 64 : i32
      %12 = arith.muli %c0_i32_5, %c64_i32 : i32
      %13 = tpu.assume_multiple %12, 64 : i32
      %14 = arith.index_cast %13 : i32 to index
      %c0 = arith.constant 0 : index
      %15 = vector.load %arg2[%14, %c0] : memref<64x128xf32, #tpu.memory_space<vmem>>, vector<64x128xf32>
      %16 = arith.index_cast %13 : i32 to index
      %c0_6 = arith.constant 0 : index
      %17 = vector.load %arg3[%16, %c0_6] : memref<64x128xf32, #tpu.memory_space<vmem>>, vector<64x128xf32>
      %18 = tpu.iota {dimensions = array<i32: 0>} : vector<64x128xi32>
      %c64_i32_7 = arith.constant 64 : i32
      %19 = arith.muli %4, %c64_i32_7 : i32
      %c64_i32_8 = arith.constant 64 : i32
      %20 = arith.muli %c0_i32_5, %c64_i32_8 : i32
      %21 = arith.addi %19, %20 : i32
      %c16_i32 = arith.constant 16 : i32
      %22 = arith.subi %c16_i32, %21 : i32
      %23 = vector.broadcast %22 : i32 to vector<64x128xi32>
      %24 = arith.cmpi slt, %18, %23 : vector<64x128xi32>
      %cst_9 = arith.constant 2.000000e+00 : f32
      %25 = vector.broadcast %cst_9 : f32 to vector<64x128xf32>
      %26 = arith.select %24, %17, %25 : vector<64x128xi1>, vector<64x128xf32>
      %cst_10 = arith.constant 0.000000e+00 : f32
      %27 = vector.broadcast %cst_10 : f32 to vector<64x128xf32>
      %28 = arith.select %24, %15, %27 : vector<64x128xi1>, vector<64x128xf32>
      %cst_11 = arith.constant -6.90675497 : f32
      %cst_12 = arith.constant 6.90675497 : f32
      %29 = vector.broadcast %cst_11 : f32 to vector<64x128xf32>
      %30 = arith.maximumf %29, %28 : vector<64x128xf32>
      %31 = vector.broadcast %cst_12 : f32 to vector<64x128xf32>
      %32 = arith.minimumf %31, %30 : vector<64x128xf32>
      %cst_13 = arith.constant 0.000000e+00 : f32
      %33 = vector.broadcast %cst_13 : f32 to vector<64x128xf32>
      %34 = arith.subf %33, %32 : vector<64x128xf32>
      %35 = math.exp %34 : vector<64x128xf32>
      %cst_14 = arith.constant 1.000000e+00 : f32
      %36 = vector.broadcast %cst_14 : f32 to vector<64x128xf32>
      %37 = arith.addf %36, %35 : vector<64x128xf32>
      %38 = math.log %37 : vector<64x128xf32>
      %cst_15 = arith.constant 0.000000e+00 : f32
      %39 = vector.broadcast %cst_15 : f32 to vector<64x128xf32>
      %40 = arith.subf %39, %38 : vector<64x128xf32>
      %41 = arith.subf %40, %32 : vector<64x128xf32>
      %cst_16 = arith.constant 1.000000e+00 : f32
      %42 = vector.broadcast %cst_16 : f32 to vector<64x128xf32>
      %43 = arith.divf %42, %37 : vector<64x128xf32>
      %44 = arith.mulf %35, %43 : vector<64x128xf32>
      %cst_17 = arith.constant 1.000000e+00 : f32
      %45 = vector.broadcast %cst_17 : f32 to vector<64x128xf32>
      %46 = arith.cmpf oeq, %26, %45 : vector<64x128xf32>
      %47 = arith.extui %46 : vector<64x128xi1> to vector<64x128xi32>
      %48 = arith.sitofp %47 : vector<64x128xi32> to vector<64x128xf32>
      %cst_18 = arith.constant 1.000000e+00 : f32
      %49 = vector.broadcast %cst_18 : f32 to vector<64x128xf32>
      %50 = arith.cmpf olt, %26, %49 : vector<64x128xf32>
      %51 = arith.extui %50 : vector<64x128xi1> to vector<64x128xi32>
      %52 = arith.sitofp %51 : vector<64x128xi32> to vector<64x128xf32>
      %cst_19 = arith.constant 1.000000e+00 : f32
      %53 = vector.broadcast %cst_19 : f32 to vector<64x128xf32>
      %54 = arith.subf %53, %26 : vector<64x128xf32>
      %55 = arith.mulf %54, %54 : vector<64x128xf32>
      %56 = arith.mulf %55, %55 : vector<64x128xf32>
      %57 = arith.mulf %44, %44 : vector<64x128xf32>
      %58 = arith.mulf %40, %57 : vector<64x128xf32>
      %59 = arith.mulf %58, %48 : vector<64x128xf32>
      %60 = arith.mulf %43, %43 : vector<64x128xf32>
      %61 = arith.mulf %41, %60 : vector<64x128xf32>
      %62 = arith.mulf %61, %56 : vector<64x128xf32>
      %63 = arith.mulf %62, %52 : vector<64x128xf32>
      %64 = arith.addf %59, %63 : vector<64x128xf32>
      %65 = vector.shape_cast %64 : vector<64x128xf32> to vector<8x8x128xf32>
      %cst_20 = arith.constant dense<0.000000e+00> : vector<8x128xf32>
      %66 = vector.multi_reduction <add>, %65, %cst_20 [0] : vector<8x8x128xf32> to vector<8x128xf32>
      %67 = arith.addf %11, %66 : vector<8x128xf32>
      %68 = vector.shape_cast %48 : vector<64x128xf32> to vector<8x8x128xf32>
      %cst_21 = arith.constant dense<0.000000e+00> : vector<8x128xf32>
      %69 = vector.multi_reduction <add>, %68, %cst_21 [0] : vector<8x8x128xf32> to vector<8x128xf32>
      %70 = arith.addf %11, %69 : vector<8x128xf32>
      %c1_i32_22 = arith.constant 1 : i32
      %c0_23 = arith.constant 0 : index
      %c0_24 = arith.constant 0 : index
      %71 = vector.load %arg4[%c0_23, %c0_24] : memref<8x128xf32, #tpu.memory_space<vmem>>, vector<8x128xf32>
      %72 = arith.addf %71, %67 : vector<8x128xf32>
      %c0_25 = arith.constant 0 : index
      %c0_26 = arith.constant 0 : index
      %73 = vector.load %arg4[%c0_25, %c0_26] : memref<8x128xf32, #tpu.memory_space<vmem>>, vector<8x128xf32>
      tpu.vector_store %arg4[%c0_25, %c0_26], %72 {strides = array<i32>} : memref<8x128xf32, #tpu.memory_space<vmem>>, vector<8x128xf32>,
      %c0_27 = arith.constant 0 : index
      %c0_28 = arith.constant 0 : index
      %74 = vector.load %arg5[%c0_27, %c0_28] : memref<8x128xf32, #tpu.memory_space<vmem>>, vector<8x128xf32>
      %75 = arith.addf %74, %70 : vector<8x128xf32>
      %c0_29 = arith.constant 0 : index
      %c0_30 = arith.constant 0 : index
      %76 = vector.load %arg5[%c0_29, %c0_30] : memref<8x128xf32, #tpu.memory_space<vmem>>, vector<8x128xf32>
      tpu.vector_store %arg5[%c0_29, %c0_30], %75 {strides = array<i32>} : memref<8x128xf32, #tpu.memory_space<vmem>>, vector<8x128xf32>,
    } else {
    }
    return
  }
  func.func @transform_0(%arg0: i32, %arg1: i32) -> (i32, i32) {
    %c1_i32 = arith.constant 1 : i32
    %0 = arith.muli %arg0, %c1_i32 : i32
    %1 = arith.addi %0, %arg1 : i32
    %c0_i32 = arith.constant 0 : i32
    %2 = arith.minsi %1, %c0_i32 : i32
    %c0_i32_0 = arith.constant 0 : i32
    %c0_i32_1 = arith.constant 0 : i32
    return %2, %c0_i32_0 : i32, i32
  }
  func.func @transform_1(%arg0: i32, %arg1: i32) -> (i32, i32) {
    %c1_i32 = arith.constant 1 : i32
    %0 = arith.muli %arg0, %c1_i32 : i32
    %1 = arith.addi %0, %arg1 : i32
    %c0_i32 = arith.constant 0 : i32
    %2 = arith.minsi %1, %c0_i32 : i32
    %c0_i32_0 = arith.constant 0 : i32
    %c0_i32_1 = arith.constant 0 : i32
    return %2, %c0_i32_0 : i32, i32
  }
  func.func @transform_2(%arg0: i32, %arg1: i32) -> (i32, i32) {
    %c0_i32 = arith.constant 0 : i32
    %c0_i32_0 = arith.constant 0 : i32
    return %arg0, %c0_i32 : i32, i32
  }
  func.func @transform_3(%arg0: i32, %arg1: i32) -> (i32, i32) {
    %c0_i32 = arith.constant 0 : i32
    %c0_i32_0 = arith.constant 0 : i32
    return %arg0, %c0_i32 : i32, i32
  }
}

</mosaic_0001>

<bundles_post_ra>
// kernel: tpu_custom_call.1
= control target key start
LH: loop header
LB: loop body
LE: loop exit
PB: predicated region body
PF: predicated region fallthrough
CT: control target
= control target key end

     0   :  { %9 = vsyncpa [#allocation3], 0  ;;  %s1230_s0 = inlined_call_operand.hbm [shape: f32[16,128], index: 0, kind: input, shape index: {}]   ;;  %s1231_s1 = inlined_call_operand.hbm [shape: f32[16,128], index: 1, kind: input, shape index: {}]   ;;  %s1232_s2 = inlined_call_operand.hbm [shape: f32[8,128], index: 2, kind: output, shape index: {0}]   ;;  %s1233_s3 = inlined_call_operand.hbm [shape: f32[8,128], index: 3, kind: output, shape index: {1}]  }
   0x1   :  { %10 = vsyncpa [#allocation6], 0 }
   0x2   :  { %11 = vsyncpa [#allocation4], 0 }
   0x3   :  { %12 = vsyncpa [#allocation9], 0 }
   0x4   :  { %23 = vsyncadd [#allocation3], 768  ;;  %s28_s14 = sshll.u32 %s1230_s0, 4  ;;  %s1093_s15 = smov [#allocation2]   ;;  %s29_s14 = int_to_ptr.hbm [resolvable:$true] %s28_s14 }
   0x5   :  { %s30_s16 = sshll.u32 %s1093_s15, 4  ;;  %s1094_s17 = smov 128   ;;  %s31_s16 = int_to_ptr.vmem [resolvable:$true] %s30_s16 }
   0x6   :  { %s1095_s18 = smov 8  }
   0x7   :  { %36 = dma.hbm_to_vmem [thread:$0]  %s29_s14, 256, %s31_s16, [#allocation3], %s1094_s17, %s1094_s17, %s1095_s18  }
   0x8   :  { %47 = vsyncadd [#allocation6], 768  ;;  %s52_s21 = sshll.u32 %s1231_s1, 4  ;;  %s1096_s22 = smov [#allocation5]   ;;  %s53_s21 = int_to_ptr.hbm [resolvable:$true] %s52_s21 }
   0x9   :  { %s54_s23 = sshll.u32 %s1096_s22, 4  ;;  %s55_s23 = int_to_ptr.vmem [resolvable:$true] %s54_s23 }
   0xa   :  { %60 = dma.hbm_to_vmem [thread:$0]  %s53_s21, 256, %s55_s23, [#allocation6], %s1094_s17, %s1094_s17, %s1095_s18  }
   0xb   :  { %1085 = dma.done.wait [#allocation3], 1024  }
   0xc   :  { %1086 = vsyncadd [#allocation3], 4294966272 }
   0xd   :  { %1087 = dma.done.wait [#allocation6], 1024  }
   0xe   :  { %1088 = vsyncadd [#allocation6], 4294966272  ;;  %v1097_v0 = vmov 0.0   ;;  %v1129_v2 = vld [vmem:[#allocation2] sm:$0xff]  ;;  %v1131_v3 = vld [vmem:[#allocation2 + $0x8] sm:$0xff]  ;;  %s1098_s0 = smov [#allocation8]  }
   0xf   :  { %971 = vpow2.f32 %v1097_v0  ;;  %v958_v5 = vclamps-f32 %v1129_v2, 6.906755  ;;  %v959_v6 = vclamps-f32 %v1131_v3, 6.906755  ;;  %v1158_v23 = vld [vmem:[#allocation5] sm:$0xff]  ;;  %v1160_v24 = vld [vmem:[#allocation5 + $0x8] sm:$0xff] }
  0x10   :  { %vm738_vm3 = vcmp.eq.f32.partialorder %v1158_v23, 1.0  ;;  %vm739_vm4 = vcmp.eq.f32.partialorder %v1160_v24, 1.0  ;;  %v786_v30 = vsub.f32 1.0, %v1158_v23  ;;  %v787_v31 = vsub.f32 1.0, %v1160_v24  ;;  %s1182_s1 = sshll.u32 %s1098_s0, 4  ;;  %s914_s26 = sshll.u32 %s1233_s3, 4  ;;  %s913_s1 = int_to_ptr.vmem [resolvable:$true] %s1182_s1  ;;  %s915_s26 = int_to_ptr.hbm [resolvable:$true] %s914_s26 }
  0x11   :  { %v546_v7 = vsub.f32 0.0, %v958_v5  ;;  %v547_v8 = vsub.f32 0.0, %v959_v6  ;;  %v1170_v34 = vsel %vm738_vm3, 1.0, %v1097_v0  ;;  %v1173_v35 = vsel %vm739_vm4, 1.0, %v1097_v0  ;;  %s1099_s3 = smov [#allocation7]   ;;  %s903_s30 = sshll.u32 %s1232_s2, 4  ;;  %s904_s30 = int_to_ptr.hbm [resolvable:$true] %s903_s30 }
  0x12   :  { %v882_v46 = vadd.f32 %v1173_v35, %v1170_v34  ;;  %v794_v52 = vmul.f32 %v786_v30, %v786_v30  ;;  %v795_v57 = vmul.f32 %v787_v31, %v787_v31  ;;  %vm762_vm14 = vcmp.lt.f32.partialorder %v1158_v23, 1.0  ;;  %s901_s27 = sshll.u32 %s1099_s3, 4  ;;  %s902_s27 = int_to_ptr.vmem [resolvable:$true] %s901_s27 }
  0x13   :  { %v554_v9 = vmul.f32 1.442695, %v546_v7  ;;  %v556_v10 = vmul.f32 1.442695, %v547_v8  ;;  %vm763_vm15 = vcmp.lt.f32.partialorder %v1160_v24, 1.0  ;;  %v962_v3 = vsel %vm762_vm14, 1.0, %v1097_v0 }
  0x14   :  { %895 = vst [vmem:[#allocation8] sm:$0xff] %v882_v46  ;;  %v803_v2 = vmul.f32 %v795_v57, %v795_v57 }
  0x15   :  { %v1127_v1 = vpop.eup %971  ;;  %917 = dma.vmem_to_hbm [thread:$0]  %s913_s1, 128, %s915_s26, [#allocation9]  }
  0x16   :  { %v572_v4 = vadd.f32 1.0, %v1127_v1 }
  0x18   :  { %973 = vrcp.f32 %v572_v4  ;;  %vm645_vm0 = vweird.f32 %v572_v4  ;;  %v651_v19 = vand.u32 2147483648, %v572_v4  ;;  %v649_v21 = vand.u32 2147483647, %v572_v4 }
  0x19   :  { %975 = vpow2.f32 %v554_v9 }
  0x1a   :  { %977 = vpow2.f32 %v556_v10  ;;  %v652_v26 = vor.u32 1.1754944e-38, %v651_v19  ;;  %vm650_vm5 = vcmp.eq.f32.partialorder %v649_v21, 8.507059e+37 }
  0x1b   :  { %979 = vlog2.f32 %v572_v4 }
  0x1e   :  { %v974_v11 = vpop.eup %973 }
  0x1f   :  { %v641_v12 = vmul.f32 %v974_v11, %v572_v4  ;;  %v1140_v14 = vpop.eup %975  ;;  %vm646_vm1 = vweird.f32 %v974_v11 }
  0x20   :  { %v1142_v15 = vpop.eup %977  ;;  %v1145_v16 = vadd.f32 1.0, %v1140_v14  ;;  %vm1154_vm2 = vmor %vm645_vm0, %vm646_vm1 }
  0x21   :  { %v642_v13 = vsub.f32 1.0, %v641_v12  ;;  %v1148_v18 = vadd.f32 1.0, %v1142_v15  ;;  %v980_v25 = vpop.eup %979 }
  0x22   :  { %981 = vlog2.f32 %v1145_v16  ;;  %v583_v33 = vmul.f32 0.6931472, %v980_v25  ;;  %vm615_vm6 = vweird.f32 %v1145_v16  ;;  %v619_v39 = vand.u32 2147483647, %v1145_v16 }
  0x23   :  { %v643_v17 = vmul.f32 %v974_v11, %v642_v13  ;;  %983 = vlog2.f32 %v1148_v18  ;;  %v621_v42 = vand.u32 2147483648, %v1145_v16  ;;  %vm630_vm7 = vweird.f32 %v1148_v18 }
  0x24   :  { %985 = vrcp.f32 %v1145_v16  ;;  %v636_v45 = vand.u32 2147483648, %v1148_v18  ;;  %v634_v48 = vand.u32 2147483647, %v1148_v18  ;;  %v596_v58 = vsub.f32 0.0, %v583_v33 }
  0x25   :  { %v644_v20 = vadd.f32 %v974_v11, %v643_v17  ;;  %987 = vrcp.f32 %v1148_v18  ;;  %v622_v55 = vor.u32 1.1754944e-38, %v621_v42  ;;  %vm620_vm11 = vcmp.eq.f32.partialorder %v619_v39, 8.507059e+37 }
  0x26   :  { %v637_v61 = vor.u32 1.1754944e-38, %v636_v45  ;;  %vm635_vm13 = vcmp.eq.f32.partialorder %v634_v48, 8.507059e+37  ;;  %v963_v25 = vsel %vm763_vm15, 1.0, %v1097_v0 }
  0x27   :  { %v648_v28 = vsel %vm1154_vm2, %v974_v11, %v644_v20  ;;  %v802_v11 = vmul.f32 %v794_v52, %v794_v52 }
  0x28   :  { %v982_v27 = vpop.eup %981  ;;  %v653_v40 = vsel %vm650_vm5, %v652_v26, %v648_v28 }
  0x29   :  { %v984_v29 = vpop.eup %983  ;;  %v1175_v37 = vmul.f32 0.6931472, %v982_v27  ;;  %v732_v49 = vmul.f32 %v1127_v1, %v653_v40  ;;  %v836_v1 = vmul.f32 %v653_v40, %v653_v40 }
  0x2a   :  { %v986_v32 = vpop.eup %985  ;;  %v581_v41 = vmul.f32 0.6931472, %v984_v29 }
  0x2b   :  { %v988_v36 = vpop.eup %987  ;;  %v611_v38 = vmul.f32 %v986_v32, %v1145_v16  ;;  %vm616_vm8 = vweird.f32 %v986_v32  ;;  %v594_v50 = vsub.f32 0.0, %v1175_v37  ;;  %v812_v63 = vmul.f32 %v732_v49, %v732_v49 }
  0x2c   :  { %v626_v43 = vmul.f32 %v988_v36, %v1148_v18  ;;  %vm631_vm9 = vweird.f32 %v988_v36  ;;  %v595_v53 = vsub.f32 0.0, %v581_v41  ;;  %vm1196_vm10 = vmor %vm615_vm6, %vm616_vm8  ;;  %v844_v19 = vmul.f32 %v836_v1, %v596_v58 }
  0x2d   :  { %v612_v44 = vsub.f32 1.0, %v611_v38  ;;  %vm1203_vm12 = vmor %vm630_vm7, %vm631_vm9  ;;  %v602_v4 = vsub.f32 %v594_v50, %v958_v5  ;;  %v820_v17 = vmul.f32 %v812_v63, %v596_v58 }
  0x2e   :  { %v627_v47 = vsub.f32 1.0, %v626_v43  ;;  %v603_v8 = vsub.f32 %v595_v53, %v959_v6  ;;  %v860_v29 = vmul.f32 0.0, %v844_v19 }
  0x2f   :  { %v613_v51 = vmul.f32 %v986_v32, %v612_v44  ;;  %v828_v28 = vmul.f32 0.0, %v820_v17 }
  0x30   :  { %v628_v56 = vmul.f32 %v988_v36, %v627_v47 }
  0x31   :  { %v614_v59 = vadd.f32 %v986_v32, %v613_v51  ;;  %v868_v37 = vadd.f32 %v860_v29, %v828_v28 }
  0x32   :  { %v629_v62 = vadd.f32 %v988_v36, %v628_v56 }
  0x33   :  { %v618_v7 = vsel %vm1196_vm10, %v986_v32, %v614_v59 }
  0x34   :  { %v623_v9 = vsel %vm620_vm11, %v622_v55, %v618_v7  ;;  %v633_v10 = vsel %vm1203_vm12, %v988_v36, %v629_v62 }
  0x35   :  { %v638_v12 = vsel %vm635_vm13, %v637_v61, %v633_v10  ;;  %v730_v13 = vmul.f32 %v1140_v14, %v623_v9  ;;  %v834_v5 = vmul.f32 %v623_v9, %v623_v9 }
  0x36   :  { %v731_v16 = vmul.f32 %v1142_v15, %v638_v12  ;;  %v835_v18 = vmul.f32 %v638_v12, %v638_v12 }
  0x37   :  { %v810_v20 = vmul.f32 %v730_v13, %v730_v13  ;;  %v842_v21 = vmul.f32 %v834_v5, %v602_v4 }
  0x38   :  { %v811_v6 = vmul.f32 %v731_v16, %v731_v16  ;;  %v843_v22 = vmul.f32 %v835_v18, %v603_v8 }
  0x39   :  { %v818_v14 = vmul.f32 %v810_v20, %v594_v50  ;;  %v850_v26 = vmul.f32 %v842_v21, %v802_v11 }
  0x3a   :  { %v819_v27 = vmul.f32 %v811_v6, %v595_v53  ;;  %v851_v15 = vmul.f32 %v843_v22, %v803_v2 }
  0x3b   :  { %v826_v30 = vmul.f32 %v1170_v34, %v818_v14  ;;  %v858_v31 = vmul.f32 %v962_v3, %v850_v26 }
  0x3c   :  { %v827_v32 = vmul.f32 %v1173_v35, %v819_v27  ;;  %v859_v33 = vmul.f32 %v963_v25, %v851_v15 }
  0x3d   :  { %v866_v23 = vadd.f32 %v858_v31, %v826_v30 }
  0x3e   :  { %v867_v36 = vadd.f32 %v859_v33, %v827_v32 }
  0x40   :  { %v874_v38 = vadd.f32 %v867_v36, %v866_v23 }
  0x42   :  { %v875_v39 = vadd.f32 %v874_v38, %v868_v37 }
  0x44   :  { %v876_v40 = vadd.f32 %v875_v39, %v868_v37 }
  0x46   :  { %v877_v24 = vadd.f32 %v876_v40, %v868_v37 }
  0x48   :  { %v878_v0 = vadd.f32 %v877_v24, %v868_v37 }
  0x4a   :  { %v879_v41 = vadd.f32 %v878_v0, %v868_v37 }
  0x4c   :  { %v880_v34 = vadd.f32 %v879_v41, %v868_v37 }
  0x4e   :  { %892 = vst [vmem:[#allocation7] sm:$0xff] %v880_v34 }
  0x4f   :  { %906 = dma.vmem_to_hbm [thread:$0]  %s902_s27, 128, %s904_s30, [#allocation4]  }
  0x50   :  { %1089 = dma.done.wait [#allocation4], 128  }
  0x51   :  { %1090 = vsyncadd [#allocation4], 4294967168 }
  0x52   :  { %1091 = dma.done.wait [#allocation9], 128  }
  0x53   :  { %1092 = vsyncadd [#allocation9], 4294967168 }
  0x54   :  { %926 = vsyncpa [#allocation3], 1 }
  0x55   :  { %927 = vsyncpa [#allocation6], 1 }
  0x56   :  { %928 = vsyncpa [#allocation4], 1 }
  0x57   :  { %929 = vsyncpa [#allocation9], 1 }

</bundles_post_ra>
